<compile_context>
chip_gen: v6e
topology: v6e:2x2x1
jax: 0.10.0
libtpu: 0.0.40
codegen_flags: <defaults>
</compile_context>

<pallas_src>
import jax
import jax.numpy as jnp
import numpy as np
from jax import lax
from jax.experimental import pallas as pl
from jax.experimental.pallas import tpu as pltpu


def _round_up(x, m):
    return -(-x // m) * m


def sm_encoder_kernel(tile_len_ref,   # SMEM scalar prefetch: [num_btiles] int32
                      last_pos_ref,   # [TB, 1] int32
                      gx_ref,         # [T_chunk, TB, 4H]  (bf16) = x @ W_ih + b
                      w_hh_ref,       # [H, 4H] f32, gate order [i, f, o, g]
                      w_out_ref,      # [H, OUTP] f32 (mu | logvar fused, lane-padded)
                      b_out_ref,      # [1, OUTP] f32
                      out_ref,        # [TB, OUTP] f32
                      h_sc, c_sc, sel_sc):   # VMEM scratch carried across time chunks
    b = pl.program_id(0)
    tc = pl.program_id(1)
    n_tchunks = pl.num_programs(1)
    T_chunk = gx_ref.shape[0]
    H = w_hh_ref.shape[0]

    @pl.when(tc == 0)
    def _():
        h_sc[...] = jnp.zeros_like(h_sc)
        c_sc[...] = jnp.zeros_like(c_sc)
        sel_sc[...] = jnp.zeros_like(sel_sc)

    w_hh = w_hh_ref[...]                 # [H, 4H]
    last_pos = last_pos_ref[...]         # [TB, 1]
    chunk_start = tc * T_chunk
    # steps actually needed inside this chunk for this batch tile
    n_steps = jnp.clip(tile_len_ref[b] - chunk_start, 0, T_chunk)

    def step(t, carry):
        h, c, sel = carry
        # only the recurrent matmul + gate math sit on the serial critical path
        gates = (gx_ref[t].astype(jnp.float32)
                 + jnp.dot(h, w_hh, preferred_element_type=jnp.float32))  # [TB, 4H]
        # gate columns were permuted in the wrapper to [i, f, o | g]:
        sig = jax.nn.sigmoid(gates[:, :3 * H])   # one 3H-wide EUP pass
        g_g = jnp.tanh(gates[:, 3 * H:])         # one H-wide EUP pass
        i_g = sig[:, 0:H]
        f_g = sig[:, H:2 * H]
        o_g = sig[:, 2 * H:3 * H]
        c_new = f_g * c + i_g * g_g
        h_new = o_g * jnp.tanh(c_new)
        # capture h at the "last valid token" position for each batch row
        sel_new = jnp.where(last_pos == chunk_start + t, h_new, sel)
        return h_new, c_new, sel_new

    h, c, sel = lax.fori_loop(0, n_steps, step,
                              (h_sc[...], c_sc[...], sel_sc[...]))
    h_sc[...] = h
    c_sc[...] = c
    sel_sc[...] = sel

    @pl.when(tc == n_tchunks - 1)
    def _():
        # fused mu / logvar projection: one MXU pass, lane-dense (128-padded) store
        out_ref[...] = (jnp.dot(sel_sc[...], w_out_ref[...],
                                preferred_element_type=jnp.float32)
                        + b_out_ref[...])


def sm_encoder_forward(token_indices, params, *, batch_tile=None, time_chunk=None,
                       gates_dtype=jnp.bfloat16):
    """token_indices: int32 [B, S].  Returns (mean, logvar), each [B, L]."""
    emb = params["embedding"]                        # [V, E]
    B, S = token_indices.shape
    H = params["w_hh_t"].shape[0]
    L = params["b_mu"].shape[-1]
    G = 4 * H

    # --- tile choices ---------------------------------------------------------
    if batch_tile is None:
        b8 = _round_up(B, 8)
        batch_tile = b8 if b8 <= 256 else 128    # one big tile when it fits
    batch_tile = _round_up(batch_tile, 8)
    B_pad = _round_up(B, batch_tile)
    num_btiles = B_pad // batch_tile

    if time_chunk is None:
        time_chunk = min(S, 128)
    S_pad = _round_up(S, time_chunk)
    num_tchunks = S_pad // time_chunk

    # --- gate-column reorder: PyTorch [i, f, g, o] -> kernel [i, f, o, g] -----
    def reord(w):
        i, f, g, o = jnp.split(w, 4, axis=-1)
        return jnp.concatenate([i, f, o, g], axis=-1)

    w_ih = reord(params["w_ih_t"])       # [E, 4H]
    w_hh = reord(params["w_hh_t"])       # [H, 4H]
    b_lstm = reord(params["b_lstm"])     # [1, 4H]

    # --- glue (plain JAX): time-major gather + hoisted input projection ------
    x_tmaj = jnp.take(emb, token_indices.T, axis=0).astype(jnp.float32)   # [S, B, E]
    gates_x = (jnp.einsum("sbe,eg->sbg", x_tmaj, w_ih,
                          preferred_element_type=jnp.float32)
               + b_lstm).astype(gates_dtype)                              # [S, B, 4H]

    valid_count = jnp.sum((token_indices != 0).astype(jnp.int32), axis=1)  # [B]
    last_pos = (valid_count - 1).astype(jnp.int32)

    # --- pad batch (sublane) and time (chunk multiple) ------------------------
    gates_x = jnp.pad(gates_x, ((0, S_pad - S), (0, B_pad - B), (0, 0)))
    last_pos = jnp.pad(last_pos, (0, B_pad - B),
                       constant_values=-1).reshape(B_pad, 1)
    valid_pad = jnp.pad(valid_count, (0, B_pad - B))
    tile_len = jnp.max(valid_pad.reshape(num_btiles, batch_tile),
                       axis=1).astype(jnp.int32)                           # [num_btiles]

    # --- fused mu|logvar head, padded to 128-lane multiple --------------------
    OUT = 2 * L
    OUTP = _round_up(OUT, 128)
    w_out = jnp.concatenate([params["w_mu_t"], params["w_lv_t"]], axis=1)  # [H, 2L]
    b_out = jnp.concatenate([params["b_mu"], params["b_lv"]], axis=1)      # [1, 2L]
    w_out = jnp.pad(w_out, ((0, 0), (0, OUTP - OUT)))
    b_out = jnp.pad(b_out, ((0, 0), (0, OUTP - OUT)))

    TB, TC = batch_tile, time_chunk

    out = pl.pallas_call(
        sm_encoder_kernel,
        out_shape=jax.ShapeDtypeStruct((B_pad, OUTP), jnp.float32),
        grid_spec=pltpu.PrefetchScalarGridSpec(
            num_scalar_prefetch=1,
            grid=(num_btiles, num_tchunks),
            in_specs=[
                pl.BlockSpec((TB, 1), lambda b, t, ml: (b, 0)),          # last_pos
                pl.BlockSpec((TC, TB, G), lambda b, t, ml: (t, b, 0)),   # gates_x chunk
                pl.BlockSpec((H, G), lambda b, t, ml: (0, 0)),           # w_hh
                pl.BlockSpec((H, OUTP), lambda b, t, ml: (0, 0)),        # w_out
                pl.BlockSpec((1, OUTP), lambda b, t, ml: (0, 0)),        # b_out
            ],
            out_specs=pl.BlockSpec((TB, OUTP), lambda b, t, ml: (b, 0)),
            scratch_shapes=[
                pltpu.VMEM((TB, H), jnp.float32),   # h
                pltpu.VMEM((TB, H), jnp.float32),   # c
                pltpu.VMEM((TB, H), jnp.float32),   # selected hidden state
            ]),
        compiler_params=pltpu.CompilerParams(
            dimension_semantics=("parallel", "arbitrary"),
            vmem_limit_bytes=48 * 1024 * 1024),
    )(tile_len, last_pos, gates_x, w_hh, w_out, b_out)

    mean = out[:B, :L]
    logvar = out[:B, L:OUT]
    return mean, logvar


def sm_encoder_reference(token_indices, params):
    """Pure-JAX reference (same math, lax.scan, f32 throughout) for validation."""
    emb = params["embedding"]
    x = jnp.take(emb, token_indices, axis=0).astype(jnp.float32)  # [B, S, E]
    H = params["w_hh_t"].shape[0]
    B, S, _ = x.shape

    def step(carry, x_t):
        h, c = carry
        gates = x_t @ params["w_ih_t"] + h @ params["w_hh_t"] + params["b_lstm"]
        i_g = jax.nn.sigmoid(gates[:, 0:H])
        f_g = jax.nn.sigmoid(gates[:, H:2 * H])
        g_g = jnp.tanh(gates[:, 2 * H:3 * H])
        o_g = jax.nn.sigmoid(gates[:, 3 * H:4 * H])
        c_new = f_g * c + i_g * g_g
        h_new = o_g * jnp.tanh(c_new)
        return (h_new, c_new), h_new

    x_tmaj = jnp.transpose(x, (1, 0, 2))
    (_, _), hs = lax.scan(step, (jnp.zeros((B, H)), jnp.zeros((B, H))), x_tmaj)
    hs = jnp.transpose(hs, (1, 0, 2))                 # [B, S, H]
    valid_count = jnp.sum((token_indices != 0).astype(jnp.int32), axis=1)
    last_pos = valid_count - 1
    sel = hs[jnp.arange(B), last_pos, :]
    mean = sel @ params["w_mu_t"] + params["b_mu"]
    logvar = sel @ params["w_lv_t"] + params["b_lv"]
    return mean, logvar


def init_params(key, vocab_size, embedding_dim, hidden_dim, latent_dim):
    ks = jax.random.split(key, 10)
    u = lambda k, shape, s: jax.random.uniform(k, shape, jnp.float32, -s, s)
    sH = 1.0 / np.sqrt(hidden_dim)
    sL = 1.0 / np.sqrt(hidden_dim)
    return {
        "embedding": jax.random.normal(ks[0], (vocab_size, embedding_dim),
                                       jnp.float32),
        # PyTorch weight_ih_l0 is [4H, E] in gate order [i,f,g,o]; we store the
        # transpose [E, 4H] (same gate order; the kernel wrapper re-permutes).
        "w_ih_t": u(ks[1], (embedding_dim, 4 * hidden_dim), sH),
        "w_hh_t": u(ks[2], (hidden_dim, 4 * hidden_dim), sH),
        "b_lstm": (u(ks[3], (1, 4 * hidden_dim), sH)
                   + u(ks[4], (1, 4 * hidden_dim), sH)),   # b_ih + b_hh
        "w_mu_t": u(ks[5], (hidden_dim, latent_dim), sL),
        "b_mu": u(ks[6], (1, latent_dim), sL),
        "w_lv_t": u(ks[7], (hidden_dim, latent_dim), sL),
        "b_lv": u(ks[8], (1, latent_dim), sL),
    }


if __name__ == "__main__":
    VOCAB, EMB, HID, LAT = 16, 8, 32, 16
    B, S = 2, 8

    key = jax.random.PRNGKey(0)
    pkey, tkey = jax.random.split(key)
    params = init_params(pkey, VOCAB, EMB, HID, LAT)

    # deterministic token ids in [1, VOCAB), with trailing padding (0)
    tokens = jax.random.randint(tkey, (B, S), 1, VOCAB, dtype=jnp.int32)
    tokens = tokens.at[0, 6:].set(0)   # batch 0 has 6 valid tokens
    tokens = tokens.at[1, 4:].set(0)   # batch 1 has 4 valid tokens

    # time_chunk=4 -> 2 time chunks, exercising the streamed-chunk carry path
    mean, logvar = sm_encoder_forward(tokens, params, time_chunk=4)
    jax.block_until_ready((mean, logvar))

    ref_mean, ref_logvar = sm_encoder_reference(tokens, params)
    # relaxed tolerance: gates_x is streamed in bf16 (f32 accumulation)
    np.testing.assert_allclose(np.asarray(mean), np.asarray(ref_mean),
                               rtol=2e-2, atol=1e-2)
    np.testing.assert_allclose(np.asarray(logvar), np.asarray(ref_logvar),
                               rtol=2e-2, atol=1e-2)

    print("KERNEL_OK")
</pallas_src>

<mosaic_0001>
module attributes {stable_mosaic.version = 11 : i64} {
  func.func @sm_encoder_kernel(%arg0: i32, %arg1: i32, %arg2: memref<1xi32, #tpu.memory_space<smem>>, %arg3: memref<8x1xi32, #tpu.memory_space<vmem>>, %arg4: memref<4x8x128xbf16, #tpu.memory_space<vmem>>, %arg5: memref<32x128xf32, #tpu.memory_space<vmem>>, %arg6: memref<32x128xf32, #tpu.memory_space<vmem>>, %arg7: memref<1x128xf32, #tpu.memory_space<vmem>>, %arg8: memref<8x128xf32, #tpu.memory_space<vmem>>, %arg9: memref<8x32xf32, #tpu.memory_space<vmem>>, %arg10: memref<8x32xf32, #tpu.memory_space<vmem>>, %arg11: memref<8x32xf32, #tpu.memory_space<vmem>>) attributes {dimension_semantics = [#tpu.dimension_semantics<parallel>, #tpu.dimension_semantics<arbitrary>], iteration_bounds = array<i64: 1, 2>, scalar_prefetch = 1 : i64, scratch_operands = 3 : i64, tpu.core_type = #tpu.core_type<tc>, window_params = [{transform_indices = @transform_0, window_bounds = array<i64: 8, 1>}, {transform_indices = @transform_1, window_bounds = array<i64: 4, 8, 128>}, {pipeline_mode = #tpu.pipeline_mode<synchronous>, transform_indices = @transform_2, window_bounds = array<i64: 32, 128>}, {pipeline_mode = #tpu.pipeline_mode<synchronous>, transform_indices = @transform_3, window_bounds = array<i64: 32, 128>}, {pipeline_mode = #tpu.pipeline_mode<synchronous>, transform_indices = @transform_4, window_bounds = array<i64: 1, 128>}, {transform_indices = @transform_5, window_bounds = array<i64: 8, 128>}]} {
    %c0_i32 = arith.constant 0 : i32
    %0 = arith.cmpi eq, %arg1, %c0_i32 : i32
    %1 = arith.extui %0 : i1 to i32
    %c0_i32_0 = arith.constant 0 : i32
    %2 = arith.cmpi ne, %1, %c0_i32_0 : i32
    scf.if %2 {
      %cst = arith.constant 0.000000e+00 : f32
      %23 = vector.broadcast %cst : f32 to vector<8x32xf32>
      %c0_21 = arith.constant 0 : index
      %c0_22 = arith.constant 0 : index
      %24 = vector.load %arg9[%c0_21, %c0_22] : memref<8x32xf32, #tpu.memory_space<vmem>>, vector<8x32xf32>
      tpu.vector_store %arg9[%c0_21, %c0_22], %23 {strides = array<i32>} : memref<8x32xf32, #tpu.memory_space<vmem>>, vector<8x32xf32>,
      %cst_23 = arith.constant 0.000000e+00 : f32
      %25 = vector.broadcast %cst_23 : f32 to vector<8x32xf32>
      %c0_24 = arith.constant 0 : index
      %c0_25 = arith.constant 0 : index
      %26 = vector.load %arg10[%c0_24, %c0_25] : memref<8x32xf32, #tpu.memory_space<vmem>>, vector<8x32xf32>
      tpu.vector_store %arg10[%c0_24, %c0_25], %25 {strides = array<i32>} : memref<8x32xf32, #tpu.memory_space<vmem>>, vector<8x32xf32>,
      %cst_26 = arith.constant 0.000000e+00 : f32
      %27 = vector.broadcast %cst_26 : f32 to vector<8x32xf32>
      %c0_27 = arith.constant 0 : index
      %c0_28 = arith.constant 0 : index
      %28 = vector.load %arg11[%c0_27, %c0_28] : memref<8x32xf32, #tpu.memory_space<vmem>>, vector<8x32xf32>
      tpu.vector_store %arg11[%c0_27, %c0_28], %27 {strides = array<i32>} : memref<8x32xf32, #tpu.memory_space<vmem>>, vector<8x32xf32>,
    } else {
    }
    %c0 = arith.constant 0 : index
    %c0_1 = arith.constant 0 : index
    %3 = vector.load %arg5[%c0, %c0_1] : memref<32x128xf32, #tpu.memory_space<vmem>>, vector<32x128xf32>
    %c0_2 = arith.constant 0 : index
    %c0_3 = arith.constant 0 : index
    %4 = vector.load %arg3[%c0_2, %c0_3] : memref<8x1xi32, #tpu.memory_space<vmem>>, vector<8x1xi32>
    %c4_i32 = arith.constant 4 : i32
    %5 = arith.muli %arg1, %c4_i32 : i32
    %6 = arith.index_cast %arg0 : i32 to index
    %7 = memref.load %arg2[%6] : memref<1xi32, #tpu.memory_space<smem>>
    %8 = arith.subi %7, %5 : i32
    %c0_i32_4 = arith.constant 0 : i32
    %c4_i32_5 = arith.constant 4 : i32
    %9 = arith.maxsi %c0_i32_4, %8 : i32
    %10 = arith.minsi %c4_i32_5, %9 : i32
    %c0_6 = arith.constant 0 : index
    %c0_7 = arith.constant 0 : index
    %11 = vector.load %arg9[%c0_6, %c0_7] : memref<8x32xf32, #tpu.memory_space<vmem>>, vector<8x32xf32>
    %c0_8 = arith.constant 0 : index
    %c0_9 = arith.constant 0 : index
    %12 = vector.load %arg10[%c0_8, %c0_9] : memref<8x32xf32, #tpu.memory_space<vmem>>, vector<8x32xf32>
    %c0_10 = arith.constant 0 : index
    %c0_11 = arith.constant 0 : index
    %13 = vector.load %arg11[%c0_10, %c0_11] : memref<8x32xf32, #tpu.memory_space<vmem>>, vector<8x32xf32>
    %c0_i32_12 = arith.constant 0 : i32
    %14 = arith.subi %10, %c0_i32_12 : i32
    %15 = arith.addi %c0_i32_12, %14 : i32
    %c1_i32 = arith.constant 1 : i32
    %16:3 = scf.for %arg12 = %c0_i32_12 to %15 step %c1_i32 iter_args(%arg13 = %11, %arg14 = %12, %arg15 = %13) -> (vector<8x32xf32>, vector<8x32xf32>, vector<8x32xf32>)  : i32 {
      %23 = arith.index_cast %arg12 : i32 to index
      %c0_21 = arith.constant 0 : index
      %c0_22 = arith.constant 0 : index
      %24 = vector.load %arg4[%23, %c0_21, %c0_22] : memref<4x8x128xbf16, #tpu.memory_space<vmem>>, vector<1x8x128xbf16>
      %25 = vector.shape_cast %24 : vector<1x8x128xbf16> to vector<8x128xbf16>
      %26 = arith.extf %25 : vector<8x128xbf16> to vector<8x128xf32>
      %cst = arith.constant dense<0.000000e+00> : vector<8x128xf32>
      %27 = tpu.matmul %arg13, %3, %cst {dimension_numbers = #tpu.dot_dimension_numbers<[1], [0], [0], [1], [0, 0, 1, 1], [], []>} : vector<8x32xf32>, vector<32x128xf32>, vector<8x128xf32> -> vector<8x128xf32>
      %28 = arith.addf %26, %27 : vector<8x128xf32>
      %29 = vector.extract_strided_slice %28 {offsets = [0, 0], sizes = [8, 96], strides = [1, 1]} : vector<8x128xf32> to vector<8x96xf32>
      %30 = arith.negf %29 : vector<8x96xf32>
      %31 = math.exp %30 : vector<8x96xf32>
      %cst_23 = arith.constant 1.000000e+00 : f32
      %32 = vector.broadcast %cst_23 : f32 to vector<8x96xf32>
      %33 = arith.addf %32, %31 : vector<8x96xf32>
      %34 = arith.divf %32, %33 : vector<8x96xf32>
      %35 = vector.extract_strided_slice %28 {offsets = [0, 96], sizes = [8, 32], strides = [1, 1]} : vector<8x128xf32> to vector<8x32xf32>
      %36 = math.tanh %35 : vector<8x32xf32>
      %37 = vector.extract_strided_slice %34 {offsets = [0, 0], sizes = [8, 32], strides = [1, 1]} : vector<8x96xf32> to vector<8x32xf32>
      %38 = vector.extract_strided_slice %34 {offsets = [0, 32], sizes = [8, 32], strides = [1, 1]} : vector<8x96xf32> to vector<8x32xf32>
      %39 = vector.extract_strided_slice %34 {offsets = [0, 64], sizes = [8, 32], strides = [1, 1]} : vector<8x96xf32> to vector<8x32xf32>
      %40 = arith.mulf %38, %arg14 : vector<8x32xf32>
      %41 = arith.mulf %37, %36 : vector<8x32xf32>
      %42 = arith.addf %40, %41 : vector<8x32xf32>
      %43 = math.tanh %42 : vector<8x32xf32>
      %44 = arith.mulf %39, %43 : vector<8x32xf32>
      %45 = arith.addi %5, %arg12 : i32
      %46 = vector.broadcast %45 : i32 to vector<8x1xi32>
      %47 = arith.cmpi eq, %4, %46 : vector<8x1xi32>
      %48 = vector.shape_cast %47 : vector<8x1xi1> to vector<8x1xi1>
      %49 = vector.broadcast %48 : vector<8x1xi1> to vector<8x32xi1>
      %50 = arith.select %49, %44, %arg15 : vector<8x32xi1>, vector<8x32xf32>
      scf.yield %44, %42, %50 : vector<8x32xf32>, vector<8x32xf32>, vector<8x32xf32>
    }
    %c0_13 = arith.constant 0 : index
    %c0_14 = arith.constant 0 : index
    %17 = vector.load %arg9[%c0_13, %c0_14] : memref<8x32xf32, #tpu.memory_space<vmem>>, vector<8x32xf32>
    tpu.vector_store %arg9[%c0_13, %c0_14], %16#0 {strides = array<i32>} : memref<8x32xf32, #tpu.memory_space<vmem>>, vector<8x32xf32>,
    %c0_15 = arith.constant 0 : index
    %c0_16 = arith.constant 0 : index
    %18 = vector.load %arg10[%c0_15, %c0_16] : memref<8x32xf32, #tpu.memory_space<vmem>>, vector<8x32xf32>
    tpu.vector_store %arg10[%c0_15, %c0_16], %16#1 {strides = array<i32>} : memref<8x32xf32, #tpu.memory_space<vmem>>, vector<8x32xf32>,
    %c0_17 = arith.constant 0 : index
    %c0_18 = arith.constant 0 : index
    %19 = vector.load %arg11[%c0_17, %c0_18] : memref<8x32xf32, #tpu.memory_space<vmem>>, vector<8x32xf32>
    tpu.vector_store %arg11[%c0_17, %c0_18], %16#2 {strides = array<i32>} : memref<8x32xf32, #tpu.memory_space<vmem>>, vector<8x32xf32>,
    %c1_i32_19 = arith.constant 1 : i32
    %20 = arith.cmpi eq, %arg1, %c1_i32_19 : i32
    %21 = arith.extui %20 : i1 to i32
    %c0_i32_20 = arith.constant 0 : i32
    %22 = arith.cmpi ne, %21, %c0_i32_20 : i32
    scf.if %22 {
      %c0_21 = arith.constant 0 : index
      %c0_22 = arith.constant 0 : index
      %23 = vector.load %arg11[%c0_21, %c0_22] : memref<8x32xf32, #tpu.memory_space<vmem>>, vector<8x32xf32>
      %c0_23 = arith.constant 0 : index
      %c0_24 = arith.constant 0 : index
      %24 = vector.load %arg6[%c0_23, %c0_24] : memref<32x128xf32, #tpu.memory_space<vmem>>, vector<32x128xf32>
      %cst = arith.constant dense<0.000000e+00> : vector<8x128xf32>
      %25 = tpu.matmul %23, %24, %cst {dimension_numbers = #tpu.dot_dimension_numbers<[1], [0], [0], [1], [0, 0, 1, 1], [], []>} : vector<8x32xf32>, vector<32x128xf32>, vector<8x128xf32> -> vector<8x128xf32>
      %c0_25 = arith.constant 0 : index
      %c0_26 = arith.constant 0 : index
      %26 = vector.load %arg7[%c0_25, %c0_26] : memref<1x128xf32, #tpu.memory_space<vmem>>, vector<1x128xf32>
      %27 = vector.broadcast %26 : vector<1x128xf32> to vector<8x128xf32>
      %28 = arith.addf %25, %27 : vector<8x128xf32>
      %c0_27 = arith.constant 0 : index
      %c0_28 = arith.constant 0 : index
      %29 = vector.load %arg8[%c0_27, %c0_28] : memref<8x128xf32, #tpu.memory_space<vmem>>, vector<8x128xf32>
      tpu.vector_store %arg8[%c0_27, %c0_28], %28 {strides = array<i32>} : memref<8x128xf32, #tpu.memory_space<vmem>>, vector<8x128xf32>,
    } else {
    }
    return
  }
  func.func @transform_0(%arg0: i32, %arg1: i32, %arg2: memref<1xi32, #tpu.memory_space<smem>>) -> (i32, i32) {
    %c0_i32 = arith.constant 0 : i32
    %c0_i32_0 = arith.constant 0 : i32
    return %arg0, %c0_i32 : i32, i32
  }
  func.func @transform_1(%arg0: i32, %arg1: i32, %arg2: memref<1xi32, #tpu.memory_space<smem>>) -> (i32, i32, i32) {
    %c0_i32 = arith.constant 0 : i32
    %c0_i32_0 = arith.constant 0 : i32
    return %arg1, %arg0, %c0_i32 : i32, i32, i32
  }
  func.func @transform_2(%arg0: i32, %arg1: i32, %arg2: memref<1xi32, #tpu.memory_space<smem>>) -> (i32, i32) {
    %c0_i32 = arith.constant 0 : i32
    %c0_i32_0 = arith.constant 0 : i32
    %c0_i32_1 = arith.constant 0 : i32
    return %c0_i32, %c0_i32_0 : i32, i32
  }
  func.func @transform_3(%arg0: i32, %arg1: i32, %arg2: memref<1xi32, #tpu.memory_space<smem>>) -> (i32, i32) {
    %c0_i32 = arith.constant 0 : i32
    %c0_i32_0 = arith.constant 0 : i32
    %c0_i32_1 = arith.constant 0 : i32
    return %c0_i32, %c0_i32_0 : i32, i32
  }
  func.func @transform_4(%arg0: i32, %arg1: i32, %arg2: memref<1xi32, #tpu.memory_space<smem>>) -> (i32, i32) {
    %c0_i32 = arith.constant 0 : i32
    %c0_i32_0 = arith.constant 0 : i32
    %c0_i32_1 = arith.constant 0 : i32
    return %c0_i32, %c0_i32_0 : i32, i32
  }
  func.func @transform_5(%arg0: i32, %arg1: i32, %arg2: memref<1xi32, #tpu.memory_space<smem>>) -> (i32, i32) {
    %c0_i32 = arith.constant 0 : i32
    %c0_i32_0 = arith.constant 0 : i32
    return %arg0, %c0_i32 : i32, i32
  }
}

</mosaic_0001>

<bundles_post_ra>
// kernel: tpu_custom_call.1
= control target key start
LH: loop header
LB: loop body
LE: loop exit
PB: predicated region body
PF: predicated region fallthrough
CT: control target
= control target key end

     0   :  { %s1412_s0 = inlined_call_operand.<no memory space> [shape: s32[1], index: 0, kind: input, shape index: {}]   ;;  %s1413_s1 = inlined_call_operand.vmem [shape: s32[8,1], index: 1, kind: input, shape index: {}]   ;;  %s1414_s2 = inlined_call_operand.hbm [shape: bf16[8,8,128], index: 2, kind: input, shape index: {}]   ;;  %s1415_s3 = inlined_call_operand.hbm [shape: f32[32,128], index: 3, kind: input, shape index: {}]   ;;  %s1416_s4 = inlined_call_operand.hbm [shape: f32[32,128], index: 4, kind: input, shape index: {}]   ;;  %s1417_s5 = inlined_call_operand.vmem [shape: f32[1,128], index: 5, kind: input, shape index: {}]   ;;  %s1418_s6 = inlined_call_operand.hbm [shape: f32[8,128], index: 6, kind: output, shape index: {}]  }
   0x1   :  { %11 = sst [smem:[#allocation6]] %s1412_s0 }
   0x2   :  { %12 = vsyncpa [#allocation8], 0 }
   0x3   :  { %14 = vsyncpa [#allocation8 + $0x1], 0 }
   0x4   :  { %15 = vsyncpa [#allocation11], 0 }
   0x5   :  { %16 = vsyncpa [#allocation9], 0  ;;  %s1183_s23 = smov 0   ;;  %s1185_s24 = smov 0  }
   0x6   :  { %s1187_s25 = smov 0   ;;  %s1189_s26 = smov 0  }
   0x7   :  { %s1191_s27 = smov 0   ;;  %s1193_s28 = smov 0  }
   0x8 LB: > { %s680_s0 = sadd.s32 4294967295, %s1098_s28   ;;  %p82_p0 = scmp.ne.s32.totalorder %s1082_s24, %s1078_s23  ;;  %s1098_s28 = sphi %s1193_s28, %s22_s28   ;;  %s1094_s27 = sphi %s1191_s27, %s1441_s27   ;;  %s1090_s26 = sphi %s1189_s26, %s1440_s26   ;;  %s1086_s25 = sphi %s1187_s25, %s1439_s25   ;;  %s1082_s24 = sphi %s1185_s24, %s1438_s24   ;;  %s1078_s23 = sphi %s1183_s23, %s1437_s23  }
   0x9   : > { %p1215_p1 = scmp.eq.s32.totalorder %s680_s0, 0  ;;  %p681_p2 = scmp.ge.s32.totalorder %s1098_s28, 1 }
   0xa   : > { %p182_p3 = scmp.lt.s32.totalorder %s1098_s28, 3  ;;  %s1128_s8 = smov [#allocation10]  }
   0xb   : > { %s1421_s29 = scalar_select %p1215_p1, 1, 0 }
   0xc   : > { %p1223_p4 = por %p1215_p1, %p82_p0  ;;  %p1227_p5 = pnand %p681_p2, %p182_p3 }
   0xd   : > { %s201_s9 = sshll.u32 %s1128_s8, 4  ;;  %s1129_s11 = smov [#allocation12]   ;;  %s202_s9 = int_to_ptr.vmem [resolvable:$true] %s201_s9 }
   0xe   : > { %p760_p6 = pneg %p1227_p5  ;;  %s214_s12 = sshll.u32 %s1129_s11, 4  ;;  %s215_s12 = int_to_ptr.vmem [resolvable:$true] %s214_s12 }
   0xf   : > { %s919_s13 = scalar_lea.vmem %s202_s9, 512  ;;  %p927_p12 = scmp.lt.s32.totalorder %s202_s9, %s202_s9 }
  0x10   : > { %p1235_p7 = pnand %p760_p6, %p1215_p1  ;;  %p920_p9 = scmp.ne.s32.totalorder %s202_s9, %s919_s13 }
  0x11   : > { %p928_p13 = scmp.lt.s32.totalorder %s919_s13, %s919_s13 }
  0x12   : > { %p910_p8 = pneg %p1235_p7 }
  0x13   : > { %p929_p0 = por %p928_p13, %p927_p12 }
  0x14   : > { %p922_p10 = pnand %p920_p9, %p910_p8 }
  0x16   : > { %p923_p11 = pneg %p922_p10 }
  0x18   : > { %p930_p2 = pnand %p929_p0, %p923_p11 }
  0x1a   : > { %933 = shalt.err (!%p930_p2)
}
  0x1b   : > { %s1130_s14 = smov 128   ;;  %s1131_s15 = smov 8  }
  0x1c   : > { %763 = dma.hbm_to_vmem [thread:$0]  (!%p1235_p7), %s1415_s3, 512, %s202_s9, [#allocation11], %s1130_s14, %s1130_s14, %s1131_s15  }
  0x1d   : > { %s945_s18 = scalar_lea.vmem %s215_s12, 512  ;;  %p953_p10 = scmp.lt.s32.totalorder %s215_s12, %s215_s12 }
  0x1e   : > { %p946_p3 = scmp.ne.s32.totalorder %s215_s12, %s945_s18  ;;  %p954_p1 = scmp.lt.s32.totalorder %s945_s18, %s945_s18 }
  0x20   : > { %p948_p6 = pnand %p946_p3, %p910_p8  ;;  %p955_p12 = por %p954_p1, %p953_p10 }
  0x22   : > { %p949_p9 = pneg %p948_p6 }
  0x24   : > { %p956_p11 = pnand %p955_p12, %p949_p9 }
  0x26   : > { %959 = shalt.err (!%p956_p11)
}
  0x27   : > { %766 = dma.hbm_to_vmem [thread:$0]  (!%p1235_p7), %s1416_s4, 512, %s215_s12, [#allocation11], %s1130_s14, %s1130_s14, %s1131_s15  }
  0x28   : > { %s31_s21 = sadd.s32 1, %s1094_s27  ;;  %s69_s22 = sadd.s32 1, %s1086_s25 }
  0x29   : > { %p32_p1 = scmp.ge.s32.totalorder %s31_s21, 2  ;;  %p76_p8 = scmp.ne.s32.totalorder %s1086_s25, %s1082_s24 }
  0x2a   : > { %p77_p13 = scmp.eq.s32.totalorder %s1098_s28, 0  ;;  %p773_p0 = scmp.lt.s32.totalorder %s1098_s28, 2 }
  0x2b   : > { %s1443_s21 = smov (%p32_p1, %s31_s21), 0  ;;  %s231_s23 = sand.u32 1, %s1086_s25  }
  0x2c   : > { %p78_p2 = por %p77_p13, %p76_p8  ;;  %s64_s8 = ssub.s32 %s1094_s27, %s1443_s21 }
  0x2d   : > { %p67_p3 = scmp.eq.s32.totalorder %s64_s8, 0  ;;  %s686_s9 = sshll.u32 %s231_s23, 4 }
  0x2e   : > { %s711_s10 = sshll.u32 %s1094_s27, 8  ;;  %s235_s15 = scalar_lea.vmem [#allocation7], %s686_s9 }
  0x2f   : > { %s1270_s11 = scalar_select %p67_p3, %s1086_s25, %s69_s22  }
  0x30   : > { %s242_s14 = scalar_lea.hbm %s1414_s2, %s711_s10  ;;  %s243_s16 = sshll.u32 %s235_s15, 4  ;;  %s244_s16 = int_to_ptr.vmem [resolvable:$true] %s243_s16 }
  0x31   : > { %p1277_p7 = pnand %p773_p0, %p78_p2  ;;  %s232_s18 = scalar_lea.sflag [#allocation8], %s231_s23 }
  0x32   : > { %s973_s19 = scalar_lea.vmem %s244_s16, 256  ;;  %s1132_s20 = smov [#allocation7]  }
  0x33   : > { %p962_p6 = pneg %p1277_p7  ;;  %p974_p9 = scmp.ne.s32.totalorder %s244_s16, %s973_s19 }
  0x34   : > { %s978_s22 = sshll.u32 %s1132_s20, 4  ;;  %s979_s22 = int_to_ptr.vmem [resolvable:$false] %s978_s22 }
  0x35   : > { %p976_p10 = pnand %p974_p9, %p962_p6  ;;  %s980_s8 = scalar_lea.vmem %s979_s22, 512 }
  0x36   : > { %p981_p11 = scmp.lt.s32.totalorder %s244_s16, %s979_s22  ;;  %p982_p1 = scmp.lt.s32.totalorder %s980_s8, %s973_s19 }
  0x37   : > { %p977_p12 = pneg %p976_p10 }
  0x38   : > { %p983_p8 = por %p982_p1, %p981_p11 }
  0x3a   : > { %p984_p13 = pnand %p983_p8, %p977_p12 }
  0x3c   : > { %987 = shalt.err (!%p984_p13)
}
  0x3d   : > { %s1133_s9 = smov 64   ;;  %s1134_s10 = smov 4  }
  0x3e   : > { %770 = dma.hbm_to_vmem [thread:$0]  (!%p1277_p7), %s242_s14, 256, %s244_s16, %s232_s18, %s1133_s9, %s1133_s9, %s1134_s10  }
  0x3f   : > { %255 = sbr.rel (%p1227_p5) target bundleno = 1030 (0x406), region = 40  ;;  %s257_s23 = sand.u32 (!%p1227_p5), 1, %s1082_s24  }
  0x40   : > { %s1288_s13 = sshll.u32 (!%p1227_p5), %s257_s23, 4  ;;  %s258_s12 = scalar_lea.sflag (!%p1227_p5), [#allocation8], %s257_s23 }
  0x41   : > { %s261_s15 = scalar_lea.vmem (!%p1227_p5), [#allocation7], %s1288_s13 }
  0x44   : > { %1065 = dma.done.wait (%p1223_p4), %s258_s12, 256  }
  0x45   : > { %1067 = vsyncadd (%p1223_p4), %s258_s12, 4294967040  ;;  %p1426_p0 = scmp.ne.s32.totalorder %s1421_s29, 0 }
  0x47   : > { %1069 = dma.done.wait (%p1426_p0), [#allocation11], 1024  }
  0x48   : > { %1071 = vsyncadd (%p1426_p0), [#allocation11], 4294966272  ;;  %p693_p5 = scmp.ne.s32.totalorder %s1090_s26, 0 }
  0x4a   : > { %303 = sbr.rel (%p693_p5) target bundleno = 82 (0x52), region = 56 }
  0x4f   : > { %vm304_vm0 = vcmask 261120   ;;  %v1135_v0 = vmov 0.0  }
  0x50   : > { %305 = vst.msk [vmem:[#allocation2] sm:$0xff] %vm304_vm0, %v1135_v0  ;;  %306 = vst.msk [vmem:[#allocation3] sm:$0xff] %vm304_vm0, %v1135_v0 }
  0x51   : > { %307 = vst.msk [vmem:[#allocation4] sm:$0xff] %vm304_vm0, %v1135_v0 }
  0x52 PF: > { %v1300_v1 = vld [vmem:[#allocation10] sm:$0xff]  ;;  %v1302_v2 = vld [vmem:[#allocation10 + $0x8] sm:$0xff]  ;;  %v1304_v3 = vld [vmem:[#allocation10 + $0x10] sm:$0xff]  ;;  %s314_s30 = sld [smem:[#allocation6]]  ;;  %s694_s14 = sshll.u32 %s1090_s26, 2 }
  0x53   : > { %v1306_v4 = vld [vmem:[#allocation10 + $0x18] sm:$0xff]  ;;  %v1311_v5 = vld [vmem:[%s1413_s1] sm:$0xff] }
  0x57   : > { %v320_v6 = vld [vmem:[#allocation2] sm:$0xff]   ;;  %v321_v7 = vld [vmem:[#allocation3] sm:$0xff]  }
  0x58   : > { %v322_v8 = vld [vmem:[#allocation4] sm:$0xff]   ;;  %s315_s16 = ssub.s32 %s314_s30, %s694_s14  ;;  %v1428_v10 = vmov %v321_v7  ;;  %v1429_v11 = vmov %v320_v6 }
  0x59   : > { %p316_p4 = scmp.gt.s32.totalorder %s315_s16, 0  ;;  %p695_p2 = scmp.lt.s32.totalorder %s315_s16, 4  ;;  %v1427_v9 = vmov %v322_v8 }
  0x5b   : > { %s1445_s16 = smov (!%p316_p4, %s315_s16), 0 }
  0x5c   : > { %s1447_s16 = smov (!%p695_p2, %s1445_s16), 4 }
  0x5d   : > { %p700_p3 = scmp.le.s32.totalorder %s1447_s16, 0 }
  0x5e   : > { %s1331_s17 = smov (!%p700_p3), 0  }
  0x5f   : > { %615 = sbr.rel (%p700_p3) target bundleno = 803 (0x323), region = 99 }
  0x64 LB: >> { %v1136_v12 = vmov 0.0   ;;  %vm1137_vm1 = vmmov 0   ;;  %vm336_vm2 = vcmask 261120   ;;  %s701_s18 = sshll.u32 %s1114_s17, 2  ;;  %v1138_v18 = vmov 0   ;;  %s1139_s20 = smov 32   ;;  %s1114_s17 = sphi %s1331_s17, %s326_s17   ;;  %v1110_v6 = vphi %v320_v6, %v1432_v6   ;;  %v1106_v7 = vphi %v321_v7, %v1431_v7   ;;  %v1102_v8 = vphi %v322_v8, %v1430_v8  }
  0x65   : >> { %724 = vmatprep.subr.mxu0 %v1136_v12  ;;  %732 = vmatprep.mubr.msk.f32.mxu0 %vm1137_vm1, %v1136_v12  ;;  %s333_s19 = scalar_lea.vmem %s261_s15, %s701_s18 [#allocation7]  ;;  %s439_s22 = sadd.s32 %s1114_s17, %s694_s14 }
  0x66   : >> { %725 = vmatpush3.msra.mxu0 %v1306_v4  ;;  %v334_v13 = vld [vmem:[%s333_s19] sm:$0xf]  ;;  %898 = vset.pattern.permute.xlu1 %v1138_v18  ;;  %v440_v23 = vstv %s439_s22  ;;  %s1140_s8 = smov 64   ;;  %s1141_s9 = smov 96  }
  0x67   : >> { %726 = vmatprep.subr.mxu0 %v1136_v12  ;;  %v335_v14 = vunpack.c.l.bf16 %v334_v13  ;;  %899 = vset.pattern.permute.xlu0 %v1138_v18  ;;  %vm441_vm3 = vcmp.eq.s32.totalorder %v1311_v5, %v440_v23  ;;  %s326_s17 = sadd.s32 1, %s1114_s17  }
  0x68   : >> { %727 = vmatpush3.msra.mxu0 %v1304_v3  ;;  %v442_v27 = vsel %vm441_vm3, 1, %v1138_v18  ;;  %p325_p7 = scmp.ge.s32.totalorder %s326_s17, %s1447_s16 }
  0x69   : >> { %728 = vmatprep.subr.mxu0 %v1136_v12 }
  0x6a   : >> { %729 = vmatpush3.msra.mxu0 %v1302_v2 }
  0x6b   : >> { %730 = vmatprep.subr.mxu0 %v1136_v12 }
  0x6c   : >> { %731 = vmatpush3.msra.mxu0 %v1300_v1 }
  0x6d   : >> { %733 = vmatmul.mubr.msk.f32.vlgmr.msra.gmra.mxu0 %vm336_vm2, %v1110_v6 }
 0x12d   : >> { %v406_v15 = vpop.f32.mrf.mxu0 }
 0x12e   : >> { %v410_v16 = vadd.f32 %v406_v15, %v335_v14 }
 0x12f   : >> { %v734_v17 = vpop.f32.mrf.mxu0 }
 0x130   : >> { %900 = vtanh.f32 %v410_v16  ;;  %v703_v20 = vmul.f32 -1.442695, %v410_v16 }
 0x132   : >> { %902 = vpow2.f32 %v703_v20 }
 0x13d   : >> { %v901_v19 = vpop.eup %900 }
 0x13e   : >> { %424 = vrot.lane.b32.xlu0 %v901_v19, %s1139_s20 }
 0x13f   : >> { %v903_v21 = vpop.eup %902 }
 0x140   : >> { %v414_v22 = vadd.f32 1.0, %v903_v21 }
 0x142   : >> { %419 = vrot.lane.b32.xlu0 %v1106_v7, %s1139_s20  ;;  %904 = vrcp.f32 %v414_v22 }
 0x14f   : >> { %v905_v24 = vpop.eup %904 }
 0x1b0   : >> { %v425_v25 = vpop.permute.xlu0 %424 }
 0x1b1   : >> { %v427_v26 = vmul.f32 %v905_v24, %v425_v25 }
 0x1b3   : >> { %429 = vrot.lane.b32.xlu1 %v427_v26, %s1139_s20 }
 0x1b4   : >> { %v420_v28 = vpop.permute.xlu0 %419 }
 0x1b5   : >> { %v422_v29 = vmul.f32 %v905_v24, %v420_v28 }
 0x1b7   : >> { %444 = vperm.xlu1 %898, %v442_v27  }
 0x1bb   : >> { %448 = vrot.lane.b32.xlu1 %v1102_v8, %s1140_s8 }
 0x225   : >> { %v430_v30 = vpop.permute.xlu1 %429 }
 0x226   : >> { %v432_v31 = vadd.f32 %v430_v30, %v422_v29 }
 0x228   : >> { %906 = vtanh.f32 %v432_v31  ;;  %457 = vrot.lane.b32.xlu1 %v432_v31, %s1141_s9 }
 0x232   : >> { %v445_v33 = vpop.permute.xlu1 %444 }
 0x233   : >> { %vm446_vm4 = vcmp.eq.s32.totalorder %v445_v33, 1 }
 0x235   : >> { %v907_v32 = vpop.eup %906 }
 0x236   : >> { %435 = vrot.lane.b32.xlu0 %v907_v32, %s1139_s20  ;;  %v449_v34 = vpop.permute.xlu1 %448 }
 0x29a   : >> { %v458_v35 = vpop.permute.xlu1 %457  }
 0x29b   : >> { %v1431_v7 = vmov %v458_v35  ;;  %v1434_v10 = vmov (%p325_p7), %v458_v35 }
 0x2a8   : >> { %v436_v36 = vpop.permute.xlu0 %435 }
 0x2a9   : >> { %v438_v37 = vmul.f32 %v905_v24, %v436_v36 }
 0x2ab   : >> { %453 = vrot.lane.b32.xlu0 %v438_v37, %s1140_s8  ;;  %v451_v38 = vsel %vm446_vm4, %v438_v37, %v449_v34 }
 0x2af   : >> { %461 = vrot.lane.b32.xlu0 %v451_v38, %s1140_s8 }
 0x31d   : >> { %v454_v39 = vpop.permute.xlu0 %453  }
 0x31e   : >> { %v1432_v6 = vmov %v454_v39  ;;  %328 = sbr.rel (!%p325_p7) target bundleno = 100 (0x64), region = 105  ;;  %v1435_v11 = vmov (%p325_p7), %v454_v39 }
 0x321   : >> { %v462_v40 = vpop.permute.xlu0 %461  }
 0x322   : >> { %v1430_v8 = vmov %v462_v40  ;;  %v1433_v9 = vmov (%p325_p7), %v462_v40 }
 0x323 PF: > { %vm464_vm5 = vcmask 261120   ;;  %p704_p6 = scmp.ne.s32.totalorder %s1090_s26, 1  ;;  %v1126_v11 = vphi %v1429_v11, %v1435_v11   ;;  %v1122_v10 = vphi %v1428_v10, %v1434_v10   ;;  %v1118_v9 = vphi %v1427_v9, %v1433_v9  }
 0x324   : > { %465 = vst.msk [vmem:[#allocation2] sm:$0xff] %vm464_vm5, %v1126_v11  ;;  %466 = vst.msk [vmem:[#allocation3] sm:$0xff] %vm464_vm5, %v1122_v10 }
 0x325   : > { %467 = vst.msk [vmem:[#allocation4] sm:$0xff] %vm464_vm5, %v1118_v9  ;;  %471 = sbr.rel (%p704_p6) target bundleno = 1015 (0x3f7), region = 67 }
 0x32a   : > { %v476_v41 = vld [vmem:[#allocation12 + $0x18] sm:$0xff]  ;;  %v1142_v42 = vmov 0.0   ;;  %v475_v43 = vld [vmem:[#allocation12 + $0x10] sm:$0xff]  ;;  %vm1143_vm6 = vmmov 0   ;;  %v474_v44 = vld [vmem:[#allocation12 + $0x8] sm:$0xff] }
 0x32b   : > { %735 = vmatprep.subr.mxu0 %v1142_v42  ;;  %743 = vmatprep.mubr.msk.f32.mxu0 %vm1143_vm6, %v1142_v42  ;;  %v473_v45 = vld [vmem:[#allocation12] sm:$0xff]  ;;  %v705_v47 = vld [vmem:[%s1417_s5] ss:$0 sm:$0xff] }
 0x32c   : > { %736 = vmatpush3.msra.mxu0 %v476_v41  ;;  %v472_v46 = vld [vmem:[#allocation4] sm:$0xff] }
 0x32d   : > { %737 = vmatprep.subr.mxu0 %v1142_v42 }
 0x32e   : > { %738 = vmatpush3.msra.mxu0 %v475_v43 }
 0x32f   : > { %739 = vmatprep.subr.mxu0 %v1142_v42 }
 0x330   : > { %740 = vmatpush3.msra.mxu0 %v474_v44 }
 0x331   : > { %741 = vmatprep.subr.mxu0 %v1142_v42 }
 0x332   : > { %742 = vmatpush3.msra.mxu0 %v473_v45 }
 0x333   : > { %744 = vmatmul.mubr.msk.f32.vlgmr.msra.gmra.mxu0 %vm464_vm5, %v472_v46 }
 0x3f3   : > { %v553_v48 = vpop.f32.mrf.mxu0 }
 0x3f4   : > { %v554_v49 = vadd.f32 %v705_v47, %v553_v48 }
 0x3f5   : > { %v745_v50 = vpop.f32.mrf.mxu0 }
 0x3f6   : > { %557 = vst [vmem:[#allocation13] sm:$0xff] %v554_v49 }
 0x3f7 PF: > { %p1379_p9 = scmp.eq.s32.totalorder %s680_s0, 1  ;;  %s1144_s13 = smov [#allocation13]  }
 0x3f8   : > { %s567_s12 = sshll.u32 %s1144_s13, 4  ;;  %s568_s12 = int_to_ptr.vmem [resolvable:$true] %s567_s12 }
 0x3f9   : > { %s988_s15 = scalar_lea.vmem %s568_s12, 128  ;;  %p995_p1 = scmp.lt.s32.totalorder %s568_s12, %s568_s12 }
 0x3fa   : > { %p989_p10 = scmp.ne.s32.totalorder %s568_s12, %s988_s15  ;;  %p996_p8 = scmp.lt.s32.totalorder %s988_s15, %s988_s15 }
 0x3fc   : > { %p990_p12 = pnand %p989_p10, %p1379_p9  ;;  %p997_p13 = por %p996_p8, %p995_p1 }
 0x3fe   : > { %p991_p11 = pneg %p990_p12 }
 0x400   : > { %p998_p0 = pnand %p997_p13, %p991_p11 }
 0x402   : > { %1001 = shalt.err (!%p998_p0)
}
 0x403   : > { %757 = dma.vmem_to_hbm [thread:$0]  (%p1379_p9), %s568_s12, 128, %s1418_s6, [#allocation9]  }
 0x404   : > { %1073 = dma.done.wait (%p1379_p9), [#allocation9], 128  }
 0x405   : > { %1075 = vsyncadd (%p1379_p9), [#allocation9], 4294967168 }
 0x406 PF: > { %s22_s28 = sadd.s32 1, %s1098_s28   ;;  %s1437_s23 = smov %s1082_s24 }
 0x407   : > { %p19_p5 = scmp.ge.s32.totalorder %s22_s28, 4   ;;  %s1438_s24 = smov %s1086_s25 }
 0x408   : > { %s1439_s25 = smov %s1270_s11  ;;  %s1440_s26 = smov %s1094_s27 }
 0x409   : > { %s1441_s27 = smov %s1443_s21  ;;  %21 = sbr.rel (!%p19_p5) target bundleno = 8 (0x8), region = 116 }
 0x40e   :  { %580 = vsyncpa [#allocation8], 1 }
 0x40f   :  { %582 = vsyncpa [#allocation8 + $0x1], 1 }
 0x410   :  { %583 = vsyncpa [#allocation11], 1 }
 0x411   :  { %584 = vsyncpa [#allocation9], 1 }
 0x412   :  { %586 = vsyncpa [#allocation9 + $0x1], 1 }

</bundles_post_ra>
